<compile_context>
chip_gen: v5e
topology: v5e:2x2
jax: 0.10.0
libtpu: 0.0.40
codegen_flags: <defaults>
</compile_context>

<pallas_src>
import functools

import jax
import jax.numpy as jnp
from jax.experimental import pallas as pl
from jax.experimental.pallas import tpu as pltpu


def _irm_kernel(n_total, tn, idx_ref, o_ref, m_ref, lab_ref, s_ref,
                out_ref, grad_acc, vacc):
    # o_ref, m_ref : (C, tn)   logits tiles (classes on sublanes, samples on lanes)
    # lab_ref      : (1, tn)   int32 labels tile
    # s_ref        : (G, tn)   selected split table tile
    # out_ref      : (3,)      SMEM scalars [irm_risk_final, erm, penalty]
    # grad_acc     : (C, G)    VMEM accumulator of sum_i split[i,g]*(p-1hot)*o
    # vacc         : (2, tn)   VMEM per-lane accumulators [weighted loss, mix loss]
    step = pl.program_id(0)
    nsteps = pl.num_programs(0)

    C = o_ref.shape[0]
    G = s_ref.shape[0]

    @pl.when(step == 0)
    def _init():
        grad_acc[...] = jnp.zeros_like(grad_acc)
        vacc[...] = jnp.zeros_like(vacc)

    # Validity mask for this tile's lanes (handles N % tn != 0; padded lanes are
    # stale VMEM and must never feed arithmetic un-masked).
    lane = jax.lax.broadcasted_iota(jnp.int32, (1, tn), 1)
    mask = (step * tn + lane) < n_total                                  # (1, tn)

    o = jnp.where(mask, o_ref[...].astype(jnp.float32), 0.0)            # (C, tn)
    m = jnp.where(mask, m_ref[...].astype(jnp.float32), 0.0)            # (C, tn)
    s = jnp.where(mask, s_ref[...].astype(jnp.float32), 0.0)            # (G, tn)
    lab = lab_ref[...]                                                   # (1, tn)

    cls = jax.lax.broadcasted_iota(jnp.int32, (C, tn), 0)
    onehot = (cls == lab).astype(jnp.float32)                            # (C, tn)

    # --- stable softmax / cross-entropy on `outputs` (single exp pass) ---
    o_max = jnp.max(o, axis=0, keepdims=True)                            # (1, tn)
    e = jnp.exp(o - o_max)                                               # (C, tn)
    denom = jnp.sum(e, axis=0, keepdims=True)                            # (1, tn)
    lse = jnp.log(denom) + o_max                                         # (1, tn)
    o_lab = jnp.sum(onehot * o, axis=0, keepdims=True)                   # (1, tn)
    loss = lse - o_lab                                                   # (1, tn)
    p = e * (1.0 / denom)                                                # (C, tn)

    # --- cross-entropy on `mix` (mean over N, accumulated per-lane) ---
    m_max = jnp.max(m, axis=0, keepdims=True)
    em = jnp.exp(m - m_max)
    m_lse = jnp.log(jnp.sum(em, axis=0, keepdims=True)) + m_max
    m_lab = jnp.sum(onehot * m, axis=0, keepdims=True)
    mix_per = jnp.where(mask, m_lse - m_lab, 0.0)                        # (1, tn)

    # --- ERM: sum_g sum_i split[i,g]*loss_i == sum_i loss_i * (sum_g split) ---
    w_loss = loss * jnp.sum(s, axis=0, keepdims=True)                    # (1, tn)
    vacc[0:1, :] = vacc[0:1, :] + w_loss
    vacc[1:2, :] = vacc[1:2, :] + mix_per

    # --- analytic grad of env-g penalty wrt scale at scale == 1 ---
    #   grad[g, j] = (1/N) sum_i split[i,g] * (p[i,j] - onehot[i,j]) * o[i,j]
    # VPU multiply + lane reduce unrolled over (small) G; contraction over i is a
    # lane reduction, so no MXU push/pop and no transpose of `s` needed.
    gcon = (p - onehot) * o                                              # (C, tn)
    for gg in range(G):
        col = jnp.sum(s[gg:gg + 1, :] * gcon, axis=1, keepdims=True)     # (C, 1)
        grad_acc[:, gg:gg + 1] = grad_acc[:, gg:gg + 1] + col

    @pl.when(step == nsteps - 1)
    def _finish():
        inv_n = jnp.float32(1.0 / n_total)
        erm = jnp.sum(vacc[0:1, :]) * inv_n
        mix_loss = jnp.sum(vacc[1:2, :]) * inv_n
        gm = grad_acc[...] * inv_n                                       # (C, G)
        penalty = jnp.sum(gm * gm)
        out_ref[0] = erm + 100.0 * penalty + mix_loss
        out_ref[1] = erm
        out_ref[2] = penalty


def irm_loss_pallas(outputs, mix, labels, split_all, idx, num_classes, tn=256):
    assert num_classes > 1, "only the cross-entropy branch is implemented"
    N, C = outputs.shape
    K, N2, G = split_all.shape
    assert N2 == N

    # Layout plumbing only (no dtype up-cast): samples on lanes, classes/envs on
    # sublanes. In a real pipeline these would be produced in this layout.
    outputs_t = outputs.T                                  # (C, N), native dtype
    mix_t = mix.T                                          # (C, N), native dtype
    labels2d = labels.astype(jnp.int32).reshape(1, N)      # (1, N)
    split_all_t = jnp.transpose(split_all, (0, 2, 1))      # (K, G, N), native dtype
    idx_arr = jnp.asarray(idx, dtype=jnp.int32).reshape(1)

    # Tile size along N (lane dim): multiple of 128, or the full dim if tiny.
    if N <= 128:
        tn = N
    else:
        tn = max(128, (min(tn, 2048) // 128) * 128)
    nsteps = pl.cdiv(N, tn)

    kernel = functools.partial(_irm_kernel, N, tn)

    out = pl.pallas_call(
        kernel,
        out_shape=jax.ShapeDtypeStruct((3,), jnp.float32),
        grid_spec=pltpu.PrefetchScalarGridSpec(
            num_scalar_prefetch=1,                         # idx -> SMEM
            grid=(nsteps,),
            in_specs=[
                pl.BlockSpec((C, tn), lambda i, idx_sref: (0, i)),           # outputs^T
                pl.BlockSpec((C, tn), lambda i, idx_sref: (0, i)),           # mix^T
                pl.BlockSpec((1, tn), lambda i, idx_sref: (0, i)),           # labels
                # split table selected by the prefetched idx; first dim squeezed
                pl.BlockSpec((None, G, tn),
                             lambda i, idx_sref: (idx_sref[0], 0, i)),       # split_all^T
            ],
            out_specs=pl.BlockSpec(memory_space=pltpu.MemorySpace.SMEM),
            scratch_shapes=[
                pltpu.VMEM((C, G), jnp.float32),   # grad accumulator
                pltpu.VMEM((2, tn), jnp.float32),  # per-lane [erm, mix] accumulators
            ],
        ),
        compiler_params=pltpu.CompilerParams(
            dimension_semantics=("arbitrary",),
            vmem_limit_bytes=32 * 1024 * 1024,
        ),
    )(idx_arr, outputs_t, mix_t, labels2d, split_all_t)

    return out[0], out[1], out[2]


def _reference(outputs, mix, labels, split_all, idx):
    # pure-JAX reference of the same math (for sanity checking)
    split = split_all[idx].astype(jnp.float32)
    o = outputs.astype(jnp.float32)
    m = mix.astype(jnp.float32)
    N, C = o.shape
    onehot = jax.nn.one_hot(labels, C, dtype=jnp.float32)

    o_lse = jax.nn.logsumexp(o, axis=-1, keepdims=True)
    loss = o_lse - jnp.sum(onehot * o, axis=-1, keepdims=True)
    p = jnp.exp(o - o_lse)

    m_lse = jax.nn.logsumexp(m, axis=-1, keepdims=True)
    mix_loss = jnp.mean(m_lse[:, 0] - jnp.sum(onehot * m, axis=-1))

    erm = jnp.sum(split * loss) / N
    gcontrib = (p - onehot) * o
    grad_mat = split.T @ gcontrib / N
    penalty = jnp.sum(grad_mat ** 2)
    return erm + 100.0 * penalty + mix_loss, erm, penalty


if __name__ == "__main__":
    key = jax.random.PRNGKey(0)
    # N deliberately not a multiple of the tile to exercise the masked tail.
    N, C, G, K = 1000, 4, 3, 2
    k1, k2, k3, k4 = jax.random.split(key, 4)

    outputs = jax.random.normal(k1, (N, C), dtype=jnp.float32)
    mix = jax.random.normal(k2, (N, C), dtype=jnp.float32)
    labels = jax.random.randint(k3, (N,), 0, C, dtype=jnp.int32)
    split_all = jax.random.uniform(k4, (K, N, G), dtype=jnp.float32)
    idx = 1

    res = irm_loss_pallas(outputs, mix, labels, split_all, idx, num_classes=C, tn=256)
    res = jax.block_until_ready(res)

    ref = _reference(outputs, mix, labels, split_all, idx)
    for a, b in zip(res, ref):
        assert jnp.allclose(a, b, atol=1e-4, rtol=1e-4), (a, b)

    print("KERNEL_OK")
</pallas_src>

<mosaic_0001>
module attributes {stable_mosaic.version = 11 : i64} {
  func.func @_irm_kernel(%arg0: i32, %arg1: memref<1xi32, #tpu.memory_space<smem>>, %arg2: memref<4x256xf32, #tpu.memory_space<vmem>>, %arg3: memref<4x256xf32, #tpu.memory_space<vmem>>, %arg4: memref<1x256xi32, #tpu.memory_space<vmem>>, %arg5: memref<1x3x256xf32, #tpu.memory_space<vmem>>, %arg6: memref<3xf32, #tpu.memory_space<smem>>, %arg7: memref<4x3xf32, #tpu.memory_space<vmem>>, %arg8: memref<2x256xf32, #tpu.memory_space<vmem>>) attributes {dimension_semantics = [#tpu.dimension_semantics<arbitrary>], iteration_bounds = array<i64: 4>, scalar_prefetch = 1 : i64, scratch_operands = 2 : i64, tpu.core_type = #tpu.core_type<tc>, window_params = [{transform_indices = @transform_0, window_bounds = array<i64: 4, 256>}, {transform_indices = @transform_1, window_bounds = array<i64: 4, 256>}, {transform_indices = @transform_2, window_bounds = array<i64: 1, 256>}, {transform_indices = @transform_3, window_bounds = array<i64: 1, 3, 256>}, {transform_indices = @transform_4, window_bounds = array<i64: 3>}]} {
    %c0_i32 = arith.constant 0 : i32
    %0 = arith.cmpi eq, %arg0, %c0_i32 : i32
    %1 = arith.extui %0 : i1 to i32
    %c0_i32_0 = arith.constant 0 : i32
    %2 = arith.cmpi ne, %1, %c0_i32_0 : i32
    scf.if %2 {
      %cst_42 = arith.constant 0.000000e+00 : f32
      %101 = vector.broadcast %cst_42 : f32 to vector<4x3xf32>
      %c0_43 = arith.constant 0 : index
      %c0_44 = arith.constant 0 : index
      %102 = vector.load %arg7[%c0_43, %c0_44] : memref<4x3xf32, #tpu.memory_space<vmem>>, vector<4x3xf32>
      tpu.vector_store %arg7[%c0_43, %c0_44], %101 {strides = array<i32>} : memref<4x3xf32, #tpu.memory_space<vmem>>, vector<4x3xf32>,
      %cst_45 = arith.constant 0.000000e+00 : f32
      %103 = vector.broadcast %cst_45 : f32 to vector<2x256xf32>
      %c0_46 = arith.constant 0 : index
      %c0_47 = arith.constant 0 : index
      %104 = vector.load %arg8[%c0_46, %c0_47] : memref<2x256xf32, #tpu.memory_space<vmem>>, vector<2x256xf32>
      tpu.vector_store %arg8[%c0_46, %c0_47], %103 {strides = array<i32>} : memref<2x256xf32, #tpu.memory_space<vmem>>, vector<2x256xf32>,
    } else {
    }
    %3 = tpu.iota {dimensions = array<i32: 1>} : vector<1x256xi32>
    %c256_i32 = arith.constant 256 : i32
    %4 = arith.muli %arg0, %c256_i32 : i32
    %5 = vector.broadcast %4 : i32 to vector<1x256xi32>
    %6 = arith.addi %5, %3 : vector<1x256xi32>
    %c1000_i32 = arith.constant 1000 : i32
    %7 = vector.broadcast %c1000_i32 : i32 to vector<1x256xi32>
    %8 = arith.cmpi slt, %6, %7 : vector<1x256xi32>
    %c0 = arith.constant 0 : index
    %c0_1 = arith.constant 0 : index
    %9 = vector.load %arg2[%c0, %c0_1] : memref<4x256xf32, #tpu.memory_space<vmem>>, vector<4x256xf32>
    %cst = arith.constant 0.000000e+00 : f32
    %10 = vector.shape_cast %8 : vector<1x256xi1> to vector<1x256xi1>
    %11 = vector.broadcast %10 : vector<1x256xi1> to vector<4x256xi1>
    %12 = vector.broadcast %cst : f32 to vector<4x256xf32>
    %13 = arith.select %11, %9, %12 : vector<4x256xi1>, vector<4x256xf32>
    %c0_2 = arith.constant 0 : index
    %c0_3 = arith.constant 0 : index
    %14 = vector.load %arg3[%c0_2, %c0_3] : memref<4x256xf32, #tpu.memory_space<vmem>>, vector<4x256xf32>
    %cst_4 = arith.constant 0.000000e+00 : f32
    %15 = vector.shape_cast %8 : vector<1x256xi1> to vector<1x256xi1>
    %16 = vector.broadcast %15 : vector<1x256xi1> to vector<4x256xi1>
    %17 = vector.broadcast %cst_4 : f32 to vector<4x256xf32>
    %18 = arith.select %16, %14, %17 : vector<4x256xi1>, vector<4x256xf32>
    %c0_5 = arith.constant 0 : index
    %c0_6 = arith.constant 0 : index
    %c0_7 = arith.constant 0 : index
    %19 = vector.load %arg5[%c0_5, %c0_6, %c0_7] : memref<1x3x256xf32, #tpu.memory_space<vmem>>, vector<1x3x256xf32>
    %20 = vector.shape_cast %19 : vector<1x3x256xf32> to vector<3x256xf32>
    %cst_8 = arith.constant 0.000000e+00 : f32
    %21 = vector.shape_cast %8 : vector<1x256xi1> to vector<1x256xi1>
    %22 = vector.broadcast %21 : vector<1x256xi1> to vector<3x256xi1>
    %23 = vector.broadcast %cst_8 : f32 to vector<3x256xf32>
    %24 = arith.select %22, %20, %23 : vector<3x256xi1>, vector<3x256xf32>
    %c0_9 = arith.constant 0 : index
    %c0_10 = arith.constant 0 : index
    %25 = vector.load %arg4[%c0_9, %c0_10] : memref<1x256xi32, #tpu.memory_space<vmem>>, vector<1x256xi32>
    %26 = tpu.iota {dimensions = array<i32: 0>} : vector<4x256xi32>
    %27 = vector.broadcast %25 : vector<1x256xi32> to vector<4x256xi32>
    %28 = arith.cmpi eq, %26, %27 : vector<4x256xi32>
    %29 = arith.extui %28 : vector<4x256xi1> to vector<4x256xi32>
    %30 = arith.sitofp %29 : vector<4x256xi32> to vector<4x256xf32>
    %cst_11 = arith.constant dense<0xFF800000> : vector<256xf32>
    %31 = vector.multi_reduction <maximumf>, %13, %cst_11 [0] : vector<4x256xf32> to vector<256xf32>
    %32 = vector.shape_cast %31 : vector<256xf32> to vector<1x256xf32>
    %33 = vector.broadcast %32 : vector<1x256xf32> to vector<4x256xf32>
    %34 = arith.subf %13, %33 : vector<4x256xf32>
    %35 = math.exp %34 : vector<4x256xf32>
    %cst_12 = arith.constant dense<0.000000e+00> : vector<256xf32>
    %36 = vector.multi_reduction <add>, %35, %cst_12 [0] : vector<4x256xf32> to vector<256xf32>
    %37 = vector.shape_cast %36 : vector<256xf32> to vector<1x256xf32>
    %38 = math.log %37 : vector<1x256xf32>
    %39 = arith.addf %38, %32 : vector<1x256xf32>
    %40 = arith.mulf %30, %13 : vector<4x256xf32>
    %cst_13 = arith.constant dense<0.000000e+00> : vector<256xf32>
    %41 = vector.multi_reduction <add>, %40, %cst_13 [0] : vector<4x256xf32> to vector<256xf32>
    %42 = vector.shape_cast %41 : vector<256xf32> to vector<1x256xf32>
    %43 = arith.subf %39, %42 : vector<1x256xf32>
    %cst_14 = arith.constant 1.000000e+00 : f32
    %44 = vector.broadcast %cst_14 : f32 to vector<1x256xf32>
    %45 = arith.divf %44, %37 : vector<1x256xf32>
    %46 = vector.broadcast %45 : vector<1x256xf32> to vector<4x256xf32>
    %47 = arith.mulf %35, %46 : vector<4x256xf32>
    %cst_15 = arith.constant dense<0xFF800000> : vector<256xf32>
    %48 = vector.multi_reduction <maximumf>, %18, %cst_15 [0] : vector<4x256xf32> to vector<256xf32>
    %49 = vector.shape_cast %48 : vector<256xf32> to vector<1x256xf32>
    %50 = vector.broadcast %49 : vector<1x256xf32> to vector<4x256xf32>
    %51 = arith.subf %18, %50 : vector<4x256xf32>
    %52 = math.exp %51 : vector<4x256xf32>
    %cst_16 = arith.constant dense<0.000000e+00> : vector<256xf32>
    %53 = vector.multi_reduction <add>, %52, %cst_16 [0] : vector<4x256xf32> to vector<256xf32>
    %54 = vector.shape_cast %53 : vector<256xf32> to vector<1x256xf32>
    %55 = math.log %54 : vector<1x256xf32>
    %56 = arith.addf %55, %49 : vector<1x256xf32>
    %57 = arith.mulf %30, %18 : vector<4x256xf32>
    %cst_17 = arith.constant dense<0.000000e+00> : vector<256xf32>
    %58 = vector.multi_reduction <add>, %57, %cst_17 [0] : vector<4x256xf32> to vector<256xf32>
    %59 = vector.shape_cast %58 : vector<256xf32> to vector<1x256xf32>
    %60 = arith.subf %56, %59 : vector<1x256xf32>
    %cst_18 = arith.constant 0.000000e+00 : f32
    %61 = vector.broadcast %cst_18 : f32 to vector<1x256xf32>
    %62 = arith.select %8, %60, %61 : vector<1x256xi1>, vector<1x256xf32>
    %cst_19 = arith.constant dense<0.000000e+00> : vector<256xf32>
    %63 = vector.multi_reduction <add>, %24, %cst_19 [0] : vector<3x256xf32> to vector<256xf32>
    %64 = vector.shape_cast %63 : vector<256xf32> to vector<1x256xf32>
    %65 = arith.mulf %43, %64 : vector<1x256xf32>
    %c0_20 = arith.constant 0 : index
    %c0_21 = arith.constant 0 : index
    %66 = vector.load %arg8[%c0_20, %c0_21] : memref<2x256xf32, #tpu.memory_space<vmem>>, vector<1x256xf32>
    %67 = arith.addf %66, %65 : vector<1x256xf32>
    %c0_22 = arith.constant 0 : index
    %c0_23 = arith.constant 0 : index
    %68 = vector.load %arg8[%c0_22, %c0_23] : memref<2x256xf32, #tpu.memory_space<vmem>>, vector<1x256xf32>
    tpu.vector_store %arg8[%c0_22, %c0_23], %67 {strides = array<i32>} : memref<2x256xf32, #tpu.memory_space<vmem>>, vector<1x256xf32>,
    %c1 = arith.constant 1 : index
    %c0_24 = arith.constant 0 : index
    %69 = vector.load %arg8[%c1, %c0_24] : memref<2x256xf32, #tpu.memory_space<vmem>>, vector<1x256xf32>
    %70 = arith.addf %69, %62 : vector<1x256xf32>
    %c1_25 = arith.constant 1 : index
    %c0_26 = arith.constant 0 : index
    %71 = vector.load %arg8[%c1_25, %c0_26] : memref<2x256xf32, #tpu.memory_space<vmem>>, vector<1x256xf32>
    tpu.vector_store %arg8[%c1_25, %c0_26], %70 {strides = array<i32>} : memref<2x256xf32, #tpu.memory_space<vmem>>, vector<1x256xf32>,
    %72 = arith.subf %47, %30 : vector<4x256xf32>
    %73 = arith.mulf %72, %13 : vector<4x256xf32>
    %74 = vector.extract_strided_slice %24 {offsets = [0, 0], sizes = [1, 256], strides = [1, 1]} : vector<3x256xf32> to vector<1x256xf32>
    %75 = vector.broadcast %74 : vector<1x256xf32> to vector<4x256xf32>
    %76 = arith.mulf %75, %73 : vector<4x256xf32>
    %cst_27 = arith.constant dense<0.000000e+00> : vector<4xf32>
    %77 = vector.multi_reduction <add>, %76, %cst_27 [1] : vector<4x256xf32> to vector<4xf32>
    %78 = vector.shape_cast %77 : vector<4xf32> to vector<4x1xf32>
    %c0_28 = arith.constant 0 : index
    %c0_29 = arith.constant 0 : index
    %79 = vector.load %arg7[%c0_28, %c0_29] : memref<4x3xf32, #tpu.memory_space<vmem>>, vector<4x1xf32>
    %80 = arith.addf %79, %78 : vector<4x1xf32>
    %c0_30 = arith.constant 0 : index
    %c0_31 = arith.constant 0 : index
    %81 = vector.load %arg7[%c0_30, %c0_31] : memref<4x3xf32, #tpu.memory_space<vmem>>, vector<4x1xf32>
    tpu.vector_store %arg7[%c0_30, %c0_31], %80 {strides = array<i32>} : memref<4x3xf32, #tpu.memory_space<vmem>>, vector<4x1xf32>,
    %82 = vector.extract_strided_slice %24 {offsets = [1, 0], sizes = [1, 256], strides = [1, 1]} : vector<3x256xf32> to vector<1x256xf32>
    %83 = vector.broadcast %82 : vector<1x256xf32> to vector<4x256xf32>
    %84 = arith.mulf %83, %73 : vector<4x256xf32>
    %cst_32 = arith.constant dense<0.000000e+00> : vector<4xf32>
    %85 = vector.multi_reduction <add>, %84, %cst_32 [1] : vector<4x256xf32> to vector<4xf32>
    %86 = vector.shape_cast %85 : vector<4xf32> to vector<4x1xf32>
    %c0_33 = arith.constant 0 : index
    %c1_34 = arith.constant 1 : index
    %87 = vector.load %arg7[%c0_33, %c1_34] : memref<4x3xf32, #tpu.memory_space<vmem>>, vector<4x1xf32>
    %88 = arith.addf %87, %86 : vector<4x1xf32>
    %c0_35 = arith.constant 0 : index
    %c1_36 = arith.constant 1 : index
    %89 = vector.load %arg7[%c0_35, %c1_36] : memref<4x3xf32, #tpu.memory_space<vmem>>, vector<4x1xf32>
    tpu.vector_store %arg7[%c0_35, %c1_36], %88 {strides = array<i32>} : memref<4x3xf32, #tpu.memory_space<vmem>>, vector<4x1xf32>,
    %90 = vector.extract_strided_slice %24 {offsets = [2, 0], sizes = [1, 256], strides = [1, 1]} : vector<3x256xf32> to vector<1x256xf32>
    %91 = vector.broadcast %90 : vector<1x256xf32> to vector<4x256xf32>
    %92 = arith.mulf %91, %73 : vector<4x256xf32>
    %cst_37 = arith.constant dense<0.000000e+00> : vector<4xf32>
    %93 = vector.multi_reduction <add>, %92, %cst_37 [1] : vector<4x256xf32> to vector<4xf32>
    %94 = vector.shape_cast %93 : vector<4xf32> to vector<4x1xf32>
    %c0_38 = arith.constant 0 : index
    %c2 = arith.constant 2 : index
    %95 = vector.load %arg7[%c0_38, %c2] : memref<4x3xf32, #tpu.memory_space<vmem>>, vector<4x1xf32>
    %96 = arith.addf %95, %94 : vector<4x1xf32>
    %c0_39 = arith.constant 0 : index
    %c2_40 = arith.constant 2 : index
    %97 = vector.load %arg7[%c0_39, %c2_40] : memref<4x3xf32, #tpu.memory_space<vmem>>, vector<4x1xf32>
    tpu.vector_store %arg7[%c0_39, %c2_40], %96 {strides = array<i32>} : memref<4x3xf32, #tpu.memory_space<vmem>>, vector<4x1xf32>,
    %c3_i32 = arith.constant 3 : i32
    %98 = arith.cmpi eq, %arg0, %c3_i32 : i32
    %99 = arith.extui %98 : i1 to i32
    %c0_i32_41 = arith.constant 0 : i32
    %100 = arith.cmpi ne, %99, %c0_i32_41 : i32
    scf.if %100 {
      %c0_42 = arith.constant 0 : index
      %c0_43 = arith.constant 0 : index
      %101 = vector.load %arg8[%c0_42, %c0_43] : memref<2x256xf32, #tpu.memory_space<vmem>>, vector<1x256xf32>
      %102 = vector.shape_cast %101 : vector<1x256xf32> to vector<1x1x256xf32>
      %cst_44 = arith.constant dense<0.000000e+00> : vector<1xf32>
      %103 = vector.multi_reduction <add>, %102, %cst_44 [1, 2] : vector<1x1x256xf32> to vector<1xf32>
      %104 = vector.shape_cast %103 : vector<1xf32> to vector<1x1x1xf32>
      %105 = vector.extract %104[0, 0, 0] : f32 from vector<1x1x1xf32>
      %cst_45 = arith.constant 1.000000e-03 : f32
      %106 = arith.mulf %105, %cst_45 : f32
      %c1_46 = arith.constant 1 : index
      %c0_47 = arith.constant 0 : index
      %107 = vector.load %arg8[%c1_46, %c0_47] : memref<2x256xf32, #tpu.memory_space<vmem>>, vector<1x256xf32>
      %108 = vector.shape_cast %107 : vector<1x256xf32> to vector<1x1x256xf32>
      %cst_48 = arith.constant dense<0.000000e+00> : vector<1xf32>
      %109 = vector.multi_reduction <add>, %108, %cst_48 [1, 2] : vector<1x1x256xf32> to vector<1xf32>
      %110 = vector.shape_cast %109 : vector<1xf32> to vector<1x1x1xf32>
      %111 = vector.extract %110[0, 0, 0] : f32 from vector<1x1x1xf32>
      %cst_49 = arith.constant 1.000000e-03 : f32
      %112 = arith.mulf %111, %cst_49 : f32
      %c0_50 = arith.constant 0 : index
      %c0_51 = arith.constant 0 : index
      %113 = vector.load %arg7[%c0_50, %c0_51] : memref<4x3xf32, #tpu.memory_space<vmem>>, vector<4x3xf32>
      %cst_52 = arith.constant 1.000000e-03 : f32
      %114 = vector.broadcast %cst_52 : f32 to vector<4x3xf32>
      %115 = arith.mulf %113, %114 : vector<4x3xf32>
      %116 = arith.mulf %115, %115 : vector<4x3xf32>
      %117 = vector.shape_cast %116 : vector<4x3xf32> to vector<1x4x3xf32>
      %cst_53 = arith.constant dense<0.000000e+00> : vector<1xf32>
      %118 = vector.multi_reduction <add>, %117, %cst_53 [1, 2] : vector<1x4x3xf32> to vector<1xf32>
      %119 = vector.shape_cast %118 : vector<1xf32> to vector<1x1x1xf32>
      %120 = vector.extract %119[0, 0, 0] : f32 from vector<1x1x1xf32>
      %cst_54 = arith.constant 1.000000e+02 : f32
      %121 = arith.mulf %cst_54, %120 : f32
      %122 = arith.addf %106, %121 : f32
      %123 = arith.addf %122, %112 : f32
      %c0_55 = arith.constant 0 : index
      %124 = memref.load %arg6[%c0_55] : memref<3xf32, #tpu.memory_space<smem>>
      memref.store %123, %arg6[%c0_55] : memref<3xf32, #tpu.memory_space<smem>>
      %c1_56 = arith.constant 1 : index
      %125 = memref.load %arg6[%c1_56] : memref<3xf32, #tpu.memory_space<smem>>
      memref.store %106, %arg6[%c1_56] : memref<3xf32, #tpu.memory_space<smem>>
      %c2_57 = arith.constant 2 : index
      %126 = memref.load %arg6[%c2_57] : memref<3xf32, #tpu.memory_space<smem>>
      memref.store %120, %arg6[%c2_57] : memref<3xf32, #tpu.memory_space<smem>>
    } else {
    }
    return
  }
  func.func @transform_0(%arg0: i32, %arg1: memref<1xi32, #tpu.memory_space<smem>>) -> (i32, i32) {
    %c0_i32 = arith.constant 0 : i32
    %c0_i32_0 = arith.constant 0 : i32
    return %c0_i32, %arg0 : i32, i32
  }
  func.func @transform_1(%arg0: i32, %arg1: memref<1xi32, #tpu.memory_space<smem>>) -> (i32, i32) {
    %c0_i32 = arith.constant 0 : i32
    %c0_i32_0 = arith.constant 0 : i32
    return %c0_i32, %arg0 : i32, i32
  }
  func.func @transform_2(%arg0: i32, %arg1: memref<1xi32, #tpu.memory_space<smem>>) -> (i32, i32) {
    %c0_i32 = arith.constant 0 : i32
    %c0_i32_0 = arith.constant 0 : i32
    return %c0_i32, %arg0 : i32, i32
  }
  func.func @transform_3(%arg0: i32, %arg1: memref<1xi32, #tpu.memory_space<smem>>) -> (i32, i32, i32) {
    %c0 = arith.constant 0 : index
    %0 = memref.load %arg1[%c0] : memref<1xi32, #tpu.memory_space<smem>>
    %c0_i32 = arith.constant 0 : i32
    %c0_i32_0 = arith.constant 0 : i32
    return %0, %c0_i32, %arg0 : i32, i32, i32
  }
  func.func @transform_4(%arg0: i32, %arg1: memref<1xi32, #tpu.memory_space<smem>>) -> i32 {
    %c0_i32 = arith.constant 0 : i32
    %c0_i32_0 = arith.constant 0 : i32
    return %c0_i32 : i32
  }
}

</mosaic_0001>

<bundles_post_ra>
// kernel: tpu_custom_call.1
= control target key start
LH: loop header
LB: loop body
LE: loop exit
PB: predicated region body
PF: predicated region fallthrough
CT: control target
= control target key end

     0   :  { %s1039_s0 = inlined_call_operand.<no memory space> [shape: s32[1], index: 0, kind: input, shape index: {}]   ;;  %s1040_s1 = inlined_call_operand.vmem [shape: f32[4,1000], index: 1, kind: input, shape index: {}]   ;;  %s1041_s2 = inlined_call_operand.vmem [shape: f32[4,1000], index: 2, kind: input, shape index: {}]   ;;  %s1042_s3 = inlined_call_operand.vmem [shape: s32[1,1000], index: 3, kind: input, shape index: {}]   ;;  %s1043_s4 = inlined_call_operand.vmem [shape: f32[2,3,1000], index: 4, kind: input, shape index: {}]   ;;  %s1044_s5 = inlined_call_operand.hbm [shape: f32[3], index: 5, kind: output, shape index: {}]  }
   0x1   :  { %10 = sst [smem:[#allocation5]] %s1039_s0 }
   0x2   :  { %11 = vsyncpa [#allocation7], 0  ;;  %s840_s20 = smov 0  }
   0x3 LB: > { %s846_s21 = sadd.s32 4294967295, %s802_s20   ;;  %p717_p0 = scmp.ge.s32.totalorder %s802_s20, 1  ;;  %s802_s20 = sphi %s840_s20, %s17_s20  }
   0x4   : > { %p203_p1 = scmp.lt.s32.totalorder %s802_s20, 5 }
   0x6   : > { %p204_p2 = pnand %p717_p0, %p203_p1 }
   0x7   : > { %s718_s22 = sshll.u32 (!%p204_p2), %s846_s21, 1  ;;  %s260_s0 = sld [smem:[#allocation5]] (!%p204_p2) }
   0x8   : > { %207 = sbr.rel (%p204_p2) target bundleno = 445 (0x1bd), region = 36  ;;  %p244_p3 = scmp.lt.s32.totalorder (!%p204_p2), %s718_s22, 7 }
   0x9   : > { %p726_p5 = scmp.ne.s32.totalorder (!%p204_p2), %s846_s21, 0 }
   0xd   : > { %s1054_s22 = smov (!%p244_p3, %s718_s22), 7  ;;  %p262_p4 = scmp.lt.s32.totalorder %s260_s0, 1 }
   0xe   : > { %s719_s23 = sshll.u32 %s1054_s22, 2  ;;  %s258_s26 = scalar_lea.vmem %s1042_s3, %s1054_s22 }
   0xf   : > { %s247_s29 = scalar_lea.vmem %s1040_s1, %s719_s23  ;;  %s253_s7 = scalar_lea.vmem %s1041_s2, %s719_s23 }
  0x10   : > { %s1056_s0 = smov (!%p262_p4, %s260_s0), 1  ;;  %275 = sbr.rel (%p726_p5) target bundleno = 24 (0x18), region = 40 }
  0x11   : > { %s724_s8 = sshll.u32 %s1056_s0, 3 }
  0x12   : > { %s267_s9 = sadd.s32 %s724_s8, %s1054_s22 }
  0x13   : > { %s725_s10 = sshll.u32 %s267_s9, 2 }
  0x14   : > { %s868_s13 = scalar_lea.vmem %s1043_s4, %s725_s10 }
  0x15   : > { %vm276_vm0 = vcmask 19456   ;;  %v804_v0 = vmov 0.0  }
  0x16   : > { %277 = vst.msk [vmem:[#allocation2] sm:$0xf] %vm276_vm0, %v804_v0 }
  0x17   : > { %278 = vst [vmem:[#allocation3] sm:$0xf] %v804_v0 }
  0x18 PF: > { %v279_v1 = vlaneseq  ;;  %s727_s14 = sshll.u32 %s846_s21, 8  ;;  %v288_v2 = vld [vmem:[%s247_s29] sm:$0xff]  ;;  %vm330_vm2 = vcmask 1043456   ;;  %v805_v35 = vmov 0.0   ;;  %vm481_vm8 = vcmask 1042432   ;;  %p730_p6 = scmp.ne.s32.totalorder %s846_s21, 3 }
  0x19   : > { %v283_v3 = vstv %s727_s14  ;;  %294 = vst [vmem:[#allocation1] ss:$2 sm:$0xff] %v288_v2  ;;  %v301_v8 = vld [vmem:[%s253_s7] sm:$0xff]  ;;  %vm502_vm15 = vcmask 1040384  }
  0x1a   : > { %v280_v4 = vand.u32 127, %v279_v1  ;;  %v319_v17 = vld [vmem:[%s258_s26] sm:$0x3]  ;;  %v321_v22 = vshrl.u32 %v279_v1, 7  ;;  %vm508_vm0 = vcmp.lt.s32.totalorder %v279_v1, 256 }
  0x1b   : > { %v310_v20 = vld [vmem:[%s868_s13] sm:$0x77]  ;;  %v322_v23 = vperm.slane %v319_v17, 0  ;;  %v323_v28 = vperm.slane %v319_v17, 1 }
  0x1c   : > { %v281_v5 = vadd.s32 128, %v280_v4  ;;  %v873_v6 = vadd.s32 %v283_v3, %v280_v4 }
  0x1d   : > { %vm324_vm4 = vcmp.eq.s32.totalorder %v321_v22, %v322_v23  ;;  %vm325_vm5 = vcmp.eq.s32.totalorder %v321_v22, %v323_v28 }
  0x1e   : > { %v875_v7 = vadd.s32 %v283_v3, %v281_v5  ;;  %vm286_vm1 = vcmp.lt.s32.totalorder %v873_v6, 1000  ;;  %v904_v36 = vsel %vm324_vm4, 1.0, %v805_v35  ;;  %v908_v38 = vsel %vm325_vm5, 1.0, %v805_v35 }
  0x1f   : > { %vm548_vm4 = vcmask 11272  }
  0x20   : > { %vm287_vm3 = vcmp.lt.s32.totalorder %v875_v7, 1000  ;;  %v295_v9 = vld.sshfl [vmem:[#allocation1] sm:$0xff pattern:$0x75316420] }
  0x21   : > { %v296_v10 = vld.sshfl [vmem:[#allocation1 + $0x8] sm:$0xff pattern:$0x75316420]  ;;  %v881_v11 = vsel %vm286_vm1, %v295_v9, 0.0 }
  0x22   : > { %v885_v12 = vsel %vm287_vm3, %v296_v10, 0.0  ;;  %303 = vst [vmem:[#allocation1] ss:$2 sm:$0xff] %v301_v8  ;;  %v331_v13 = vsel %vm330_vm2, %v881_v11, -inf  ;;  %v371_v39 = vmul.f32 %v904_v36, %v881_v11 }
  0x23   : > { %v332_v14 = vrot.slane %v331_v13, 4  ;;  %v338_v15 = vsel %vm330_vm2, %v885_v12, -inf  ;;  %v372_v42 = vmul.f32 %v908_v38, %v885_v12 }
  0x24   : > { %v339_v16 = vrot.slane %v338_v15, 4  ;;  %v373_v43 = vsel %vm330_vm2, %v371_v39, 0.0 }
  0x25   : > { %v333_v18 = vmax.f32 %v331_v13, %v332_v14  ;;  %v380_v44 = vsel %vm330_vm2, %v372_v42, 0.0  ;;  %v374_v47 = vrot.slane %v373_v43, 4 }
  0x26   : > { %v340_v19 = vmax.f32 %v338_v15, %v339_v16  ;;  %v381_v48 = vrot.slane %v380_v44, 4 }
  0x27   : > { %v334_v21 = vrot.slane %v333_v18, 2  ;;  %v375_v56 = vadd.f32 %v374_v47, %v373_v43 }
  0x28   : > { %v341_v24 = vrot.slane %v340_v19, 2  ;;  %v382_v58 = vadd.f32 %v381_v48, %v380_v44 }
  0x29   : > { %v304_v25 = vld.sshfl [vmem:[#allocation1] sm:$0xff pattern:$0x75316420]  ;;  %v305_v26 = vld.sshfl [vmem:[#allocation1 + $0x8] sm:$0xff pattern:$0x75316420]  ;;  %v335_v27 = vmax.f32 %v333_v18, %v334_v21 }
  0x2a   : > { %312 = vst [vmem:[#allocation1] ss:$2 sm:$0xff] %v310_v20  ;;  %v342_v29 = vmax.f32 %v340_v19, %v341_v24  ;;  %v308_v45 = vsel %vm286_vm1, %v304_v25, 0.0  ;;  %v309_v46 = vsel %vm287_vm3, %v305_v26, 0.0  ;;  %v376_v3 = vrot.slane %v375_v56, 2 }
  0x2b   : > { %v336_v30 = vrot.slane %v335_v27, 1  ;;  %v421_v52 = vsel %vm330_vm2, %v308_v45, -inf  ;;  %v428_v53 = vsel %vm330_vm2, %v309_v46, -inf  ;;  %v383_v5 = vrot.slane %v382_v58, 2 }
  0x2c   : > { %v343_v31 = vrot.slane %v342_v29, 1  ;;  %v422_v59 = vrot.slane %v421_v52, 4  ;;  %v429_v60 = vrot.slane %v428_v53, 4  ;;  %v377_v17 = vadd.f32 %v376_v3, %v375_v56 }
  0x2d   : > { %v898_v32 = vmax.f32 %v335_v27, %v336_v30  ;;  %v384_v19 = vadd.f32 %v383_v5, %v382_v58 }
  0x2e   : > { %v900_v33 = vmax.f32 %v342_v29, %v343_v31  ;;  %v423_v63 = vmax.f32 %v421_v52, %v422_v59  ;;  %v430_v0 = vmax.f32 %v428_v53, %v429_v60  ;;  %v378_v28 = vrot.slane %v377_v17, 1 }
  0x2f   : > { %v345_v34 = vsub.f32 %v881_v11, %v898_v32  ;;  %v385_v29 = vrot.slane %v384_v19, 1 }
  0x30   : > { %v346_v37 = vsub.f32 %v885_v12, %v900_v33  ;;  %v424_v8 = vrot.slane %v423_v63, 2  ;;  %v431_v9 = vrot.slane %v430_v0, 2 }
  0x31   : > { %v347_v40 = vmul.f32 1.442695, %v345_v34  ;;  %v313_v23 = vld.sshfl [vmem:[#allocation1] sm:$0xff pattern:$0x75316420]  ;;  %v951_v42 = vadd.f32 %v385_v29, %v384_v19 }
  0x32   : > { %v349_v41 = vmul.f32 1.442695, %v346_v37  ;;  %v425_v14 = vmax.f32 %v423_v63, %v424_v8  ;;  %v432_v15 = vmax.f32 %v430_v0, %v431_v9  ;;  %v314_v27 = vld.sshfl [vmem:[#allocation1 + $0x8] sm:$0xff pattern:$0x75316420]  ;;  %v940_v31 = vsel %vm286_vm1, %v313_v23, 0.0 }
  0x33   : > { %758 = vpow2.f32 %v347_v40  ;;  %v944_v34 = vsel %vm287_vm3, %v314_v27, 0.0  ;;  %v947_v37 = vadd.f32 %v378_v28, %v377_v17  ;;  %v461_v40 = vmul.f32 %v904_v36, %v308_v45 }
  0x34   : > { %760 = vpow2.f32 %v349_v41  ;;  %v426_v20 = vrot.slane %v425_v14, 1  ;;  %v433_v21 = vrot.slane %v432_v15, 1  ;;  %v462_v41 = vmul.f32 %v908_v38, %v309_v46 }
  0x35   : > { %v463_v47 = vsel %vm330_vm2, %v461_v40, 0.0  ;;  %v524_v48 = vperm.slane %v940_v31, 0 }
  0x36   : > { %v932_v25 = vmax.f32 %v425_v14, %v426_v20  ;;  %v934_v26 = vmax.f32 %v432_v15, %v433_v21  ;;  %v464_v59 = vrot.slane %v463_v47, 4 }
  0x38   : > { %v435_v30 = vsub.f32 %v308_v45, %v932_v25  ;;  %v436_v35 = vsub.f32 %v309_v46, %v934_v26  ;;  %v465_v23 = vadd.f32 %v464_v59, %v463_v47 }
  0x39   : > { %v920_v49 = vpop.eup %758 }
  0x3a   : > { %v922_v50 = vpop.eup %760  ;;  %v351_v51 = vsel %vm330_vm2, %v920_v49, 0.0  ;;  %v437_v39 = vmul.f32 1.442695, %v435_v30  ;;  %v439_v44 = vmul.f32 1.442695, %v436_v35  ;;  %v537_v30 = vperm.slane %v940_v31, 1 }
  0x3b   : > { %v352_v54 = vrot.slane %v351_v51, 4  ;;  %v358_v55 = vsel %vm330_vm2, %v922_v50, 0.0 }
  0x3c   : > { %v359_v57 = vrot.slane %v358_v55, 4 }
  0x3d   : > { %v353_v61 = vadd.f32 %v352_v54, %v351_v51  ;;  %v525_v51 = vperm.slane %v944_v34, 0 }
  0x3e   : > { %v360_v62 = vadd.f32 %v359_v57, %v358_v55  ;;  %v470_v55 = vsel %vm330_vm2, %v462_v41, 0.0 }
  0x3f   : > { %v354_v2 = vrot.slane %v353_v61, 2 }
  0x40   : > { %v361_v4 = vrot.slane %v360_v62, 2 }
  0x41   : > { %v355_v10 = vadd.f32 %v354_v2, %v353_v61  ;;  %v482_v61 = vsel %vm481_vm8, %v940_v31, 0.0  ;;  %v471_v2 = vrot.slane %v470_v55, 4 }
  0x42   : > { %v362_v13 = vadd.f32 %v361_v4, %v360_v62  ;;  %v489_v62 = vsel %vm481_vm8, %v944_v34, 0.0  ;;  %v483_v3 = vrot.slane %v482_v61, 4 }
  0x43   : > { %v356_v16 = vrot.slane %v355_v10, 1  ;;  %v472_v29 = vadd.f32 %v471_v2, %v470_v55 }
  0x44   : > { %v363_v18 = vrot.slane %v362_v13, 1 }
  0x45   : > { %v357_v22 = vadd.f32 %v356_v16, %v355_v10  ;;  %v490_v10 = vrot.slane %v489_v62, 4  ;;  %v473_v59 = vrot.slane %v472_v29, 2 }
  0x46   : > { %v930_v24 = vadd.f32 %v363_v18, %v362_v13  ;;  %v484_v18 = vadd.f32 %v483_v3, %v482_v61 }
  0x47   : > { %762 = vrcp.f32 %v357_v22  ;;  %v398_v43 = vand.u32 2147483647, %v357_v22  ;;  %vm394_vm6 = vweird.f32 %v357_v22  ;;  %v400_v53 = vand.u32 2147483648, %v357_v22 }
  0x48   : > { %764 = vrcp.f32 %v930_v24  ;;  %vm409_vm7 = vweird.f32 %v930_v24  ;;  %v413_v54 = vand.u32 2147483647, %v930_v24  ;;  %v415_v58 = vand.u32 2147483648, %v930_v24 }
  0x49   : > { %766 = vlog2.f32 %v357_v22  ;;  %vm959_vm9 = vcmp.eq.f32.partialorder %v398_v43, 8.507059e+37  ;;  %v401_v8 = vor.u32 1.1754944e-38, %v400_v53  ;;  %v491_v41 = vadd.f32 %v490_v10, %v489_v62 }
  0x4a   : > { %768 = vpow2.f32 %v437_v39  ;;  %vm967_vm12 = vcmp.eq.f32.partialorder %v413_v54, 8.507059e+37  ;;  %v416_v16 = vor.u32 1.1754944e-38, %v415_v58  ;;  %v474_v10 = vadd.f32 %v473_v59, %v472_v29 }
  0x4b   : > { %770 = vpow2.f32 %v439_v44 }
  0x4c   : > { %772 = vlog2.f32 %v930_v24  ;;  %v475_v29 = vrot.slane %v474_v10, 1 }
  0x4d   : > { %v763_v52 = vpop.eup %762 }
  0x4e   : > { %v765_v45 = vpop.eup %764  ;;  %v390_v46 = vmul.f32 %v763_v52, %v357_v22  ;;  %vm395_vm10 = vweird.f32 %v763_v52 }
  0x4f   : > { %v405_v57 = vmul.f32 %v765_v45, %v930_v24  ;;  %v767_v63 = vpop.eup %766  ;;  %vm410_vm11 = vweird.f32 %v765_v45  ;;  %vm972_vm13 = vmor %vm394_vm6, %vm395_vm10  ;;  %v551_v24 = vperm.slane %v944_v34, 2 }
  0x50   : > { %v391_v60 = vsub.f32 1.0, %v390_v46  ;;  %v769_v4 = vpop.eup %768  ;;  %vm980_vm14 = vmor %vm409_vm7, %vm410_vm11  ;;  %v366_v35 = vmul.f32 0.6931472, %v767_v63  ;;  %v485_v46 = vrot.slane %v484_v18, 2 }
  0x51   : > { %v406_v0 = vsub.f32 1.0, %v405_v57  ;;  %v771_v13 = vpop.eup %770  ;;  %v441_v17 = vsel %vm330_vm2, %v769_v4, 0.0  ;;  %v466_v57 = vrot.slane %v465_v23, 2  ;;  %v538_v4 = vperm.slane %v944_v34, 1 }
  0x52   : > { %v392_v5 = vmul.f32 %v763_v52, %v391_v60  ;;  %v442_v21 = vrot.slane %v441_v17, 4  ;;  %v448_v22 = vsel %vm330_vm2, %v771_v13, 0.0  ;;  %v492_v60 = vrot.slane %v491_v41, 2 }
  0x53   : > { %v407_v15 = vmul.f32 %v765_v45, %v406_v0  ;;  %v449_v28 = vrot.slane %v448_v22, 4  ;;  %v486_v63 = vadd.f32 %v485_v46, %v484_v18 }
  0x54   : > { %v393_v19 = vadd.f32 %v763_v52, %v392_v5  ;;  %v443_v40 = vadd.f32 %v442_v21, %v441_v17  ;;  %v493_v0 = vadd.f32 %v492_v60, %v491_v41 }
  0x55   : > { %v408_v27 = vadd.f32 %v765_v45, %v407_v15  ;;  %v450_v53 = vadd.f32 %v449_v28, %v448_v22  ;;  %v487_v15 = vrot.slane %v486_v63, 1 }
  0x56   : > { %v397_v39 = vsel %vm972_vm13, %v763_v52, %v393_v19  ;;  %v444_v55 = vrot.slane %v443_v40, 2 }
  0x57   : > { %v402_v43 = vsel %vm959_vm9, %v401_v8, %v397_v39  ;;  %v412_v44 = vsel %vm980_vm14, %v765_v45, %v408_v27  ;;  %v451_v52 = vrot.slane %v450_v53, 2  ;;  %v550_v45 = vperm.slane %v940_v31, 2 }
  0x58   : > { %v417_v47 = vsel %vm967_vm12, %v416_v16, %v412_v44  ;;  %v419_v54 = vmul.f32 %v920_v49, %v402_v43  ;;  %v445_v61 = vadd.f32 %v444_v55, %v443_v40  ;;  %v369_v49 = vadd.f32 %v366_v35, %v898_v32  ;;  %v773_v16 = vpop.eup %772 }
  0x59   : > { %v420_v58 = vmul.f32 %v922_v50, %v417_v47  ;;  %v452_v62 = vadd.f32 %v451_v52, %v450_v53  ;;  %v467_v8 = vadd.f32 %v466_v57, %v465_v23  ;;  %v494_v32 = vrot.slane %v493_v0, 1  ;;  %v498_v57 = vld [vmem:[#allocation3] ss:$2 sm:$0x3] }
  0x5a   : > { %v520_v56 = vsub.f32 %v419_v54, %v904_v36  ;;  %v446_v3 = vrot.slane %v445_v61, 1  ;;  %v368_v20 = vmul.f32 0.6931472, %v773_v16  ;;  %v387_v31 = vsub.f32 %v369_v49, %v947_v37 }
  0x5b   : > { %v521_v2 = vsub.f32 %v420_v58, %v908_v38  ;;  %v453_v5 = vrot.slane %v452_v62, 1  ;;  %v488_v27 = vadd.f32 %v487_v15, %v486_v63  ;;  %v495_v34 = vadd.f32 %v494_v32, %v493_v0  ;;  %v533_v0 = vld [vmem:[#allocation2] sm:$0xf] }
  0x5c   : > { %v522_v50 = vmul.f32 %v520_v56, %v881_v11  ;;  %v447_v9 = vadd.f32 %v446_v3, %v445_v61 }
  0x5d   : > { %v523_v36 = vmul.f32 %v521_v2, %v885_v12  ;;  %v454_v38 = vadd.f32 %v453_v5, %v452_v62  ;;  %v496_v53 = vmul.f32 %v488_v27, %v387_v31 }
  0x5e   : > { %v526_v13 = vmul.f32 %v524_v48, %v522_v50  ;;  %v552_v14 = vmul.f32 %v550_v45, %v522_v50  ;;  %774 = vlog2.f32 %v447_v9  ;;  %v539_v18 = vmul.f32 %v537_v30, %v522_v50 }
  0x5f   : > { %v527_v11 = vmul.f32 %v525_v51, %v523_v36  ;;  %v540_v12 = vmul.f32 %v538_v4, %v523_v36  ;;  %776 = vlog2.f32 %v454_v38  ;;  %v553_v21 = vmul.f32 %v551_v24, %v523_v36 }
  0x60   : > { %v528_v17 = vsel %vm330_vm2, %v526_v13, 0.0  ;;  %v468_v48 = vrot.slane %v467_v8, 1  ;;  %v554_v23 = vsel %vm330_vm2, %v552_v14, 0.0  ;;  %v370_v51 = vadd.f32 %v368_v20, %v900_v33 }
  0x61   : > { %v529_v19 = vsel %vm330_vm2, %v527_v11, 0.0  ;;  %v555_v28 = vsel %vm330_vm2, %v553_v21, 0.0  ;;  %v541_v39 = vsel %vm330_vm2, %v539_v18, 0.0  ;;  %v542_v40 = vsel %vm330_vm2, %v540_v12, 0.0 }
  0x62   : > { %v530_v22 = vadd.f32 %v529_v19, %v528_v17  ;;  %v556_v30 = vadd.f32 %v555_v28, %v554_v23  ;;  %v388_v35 = vsub.f32 %v370_v51, %v951_v42  ;;  %v469_v44 = vadd.f32 %v468_v48, %v467_v8 }
  0x63   : > { %v476_v33 = vadd.f32 %v475_v29, %v474_v10  ;;  %v543_v54 = vadd.f32 %v542_v40, %v541_v39  ;;  %vm535_vm2 = vcmask 3072  }
  0x64   : > { %531 = vadd.xlane.f32.xlu0 %v530_v22  ;;  %v775_v37 = vpop.eup %774  ;;  %557 = vadd.xlane.f32.xlu1 %v556_v30  ;;  %v497_v46 = vmul.f32 %v495_v34, %v388_v35 }
  0x65   : > { %v777_v41 = vpop.eup %776  ;;  %v456_v43 = vmul.f32 0.6931472, %v775_v37 }
  0x66   : > { %v458_v47 = vmul.f32 0.6931472, %v777_v41  ;;  %v501_v58 = vrot.slane %v497_v46, 7 }
  0x67   : > { %v459_v55 = vadd.f32 %v456_v43, %v932_v25  ;;  %v512_v25 = vld [vmem:[#allocation3 + $0x1] ss:$2 sm:$0x3] }
  0x68   : > { %v460_v42 = vadd.f32 %v458_v47, %v934_v26  ;;  %v503_v59 = vsel %vm502_vm15, %v496_v53, %v501_v58 }
  0x69   : > { %v477_v52 = vsub.f32 %v459_v55, %v469_v44  ;;  %v505_v61 = vadd.f32 %v503_v59, %v498_v57 }
  0x6a   : > { %v478_v60 = vsub.f32 %v460_v42, %v476_v33 }
  0x6b   : > { %v479_v56 = vsel %vm286_vm1, %v477_v52, 0.0  ;;  %510 = vst.msk [vmem:[#allocation3] ss:$2 sm:$0x3] %vm508_vm0, %v505_v61  ;;  %vm561_vm1 = vcmask 19472  }
  0x6c   : > { %544 = vadd.xlane.f32.xlu0 %v543_v54  ;;  %v480_v45 = vsel %vm287_vm3, %v478_v60, 0.0 }
  0x6d   : > { %v515_v62 = vrot.slane %v480_v45, 7 }
  0x6f   : > { %v516_v63 = vsel %vm502_vm15, %v479_v56, %v515_v62 }
  0x70   : > { %v518_v26 = vadd.f32 %v516_v63, %v512_v25 }
  0x72   : > { %519 = vst.msk [vmem:[#allocation3 + $0x1] ss:$2 sm:$0x3] %vm508_vm0, %v518_v26 }
  0xd7   : > { %v532_v1 = vpop.xlane.xlu0 %531  ;;  %v558_v50 = vpop.xlane.xlu1 %557 }
  0xd8   : > { %v534_v2 = vadd.f32 %v533_v0, %v532_v1 }
  0xda   : > { %536 = vst.msk [vmem:[#allocation2] sm:$0xf] %vm535_vm2, %v534_v2 }
  0xdf   : > { %v545_v49 = vpop.xlane.xlu0 %544 }
  0xe1   : > { %v546_v3 = vld [vmem:[#allocation2] sm:$0xf] }
  0xe2   : > { %v547_v6 = vadd.f32 %v546_v3, %v545_v49 }
  0xe4   : > { %549 = vst.msk [vmem:[#allocation2] sm:$0xf] %vm548_vm4, %v547_v6 }
  0xea   : > { %566 = sbr.rel (%p730_p6) target bundleno = 439 (0x1b7), region = 44 }
  0xeb   : > { %v559_v7 = vld [vmem:[#allocation2] sm:$0xf] }
  0xec   : > { %v560_v4 = vadd.f32 %v559_v7, %v558_v50 }
  0xee   : > { %562 = vst.msk [vmem:[#allocation2] sm:$0xf] %vm561_vm1, %v560_v4 }
  0xef   : > { %v567_v5 = vld [vmem:[#allocation3] ss:$2 sm:$0x3]  ;;  %vm608_vm3 = vcmask 19456  }
  0xf0   : > { %v569_v36 = vperm.slane %v567_v5, 0  ;;  %v570_v24 = vperm.slane %v567_v5, 1  ;;  %v586_v10 = vld [vmem:[#allocation3 + $0x1] ss:$2 sm:$0x3] }
  0xf1   : > { %v588_v15 = vperm.slane %v586_v10, 0  ;;  %v589_v11 = vperm.slane %v586_v10, 1 }
  0xf2   : > { %v573_v13 = vsel %vm502_vm15, %v569_v36, 0.0  ;;  %v574_v14 = vsel %vm502_vm15, %v570_v24, 0.0 }
  0xf3   : > { %v575_v32 = vadd.f32 %v574_v14, %v573_v13  ;;  %v592_v17 = vsel %vm502_vm15, %v588_v15, 0.0  ;;  %v593_v18 = vsel %vm502_vm15, %v589_v11, 0.0 }
  0xf4   : > { %v594_v12 = vadd.f32 %v593_v18, %v592_v17 }
  0xf5   : > { %v605_v8 = vld [vmem:[#allocation2] sm:$0xf]  ;;  %576 = vadd.xlane.f32.xlu0 %v575_v32 }
  0xf6   : > { %v606_v9 = vmul.f32 0.001, %v605_v8 }
  0xf8   : > { %v607_v38 = vmul.f32 %v606_v9, %v606_v9 }
  0xfa   : > { %v609_v16 = vsel %vm608_vm3, %v607_v38, 0.0 }
  0xfb   : > { %610 = vadd.xlane.f32.xlu1 %v609_v16 }
  0xfd   : > { %595 = vadd.xlane.f32.xlu0 %v594_v12 }
 0x168   : > { %v577_v19 = vpop.xlane.xlu0 %576 }
 0x169   : > { %v578_v21 = vrot.slane %v577_v19, 4 }
 0x16b   : > { %v579_v48 = vadd.f32 %v578_v21, %v577_v19 }
 0x16d   : > { %v580_v23 = vrot.slane %v579_v48, 2 }
 0x16e   : > { %v611_v20 = vpop.xlane.xlu1 %610 }
 0x16f   : > { %v612_v31 = vrot.slane %v611_v20, 4  ;;  %v581_v27 = vadd.f32 %v580_v23, %v579_v48 }
 0x170   : > { %v596_v51 = vpop.xlane.xlu0 %595 }
 0x171   : > { %v613_v22 = vadd.f32 %v612_v31, %v611_v20  ;;  %v597_v28 = vrot.slane %v596_v51, 4  ;;  %v582_v29 = vrot.slane %v581_v27, 1 }
 0x173   : > { %v614_v34 = vrot.slane %v613_v22, 2  ;;  %v598_v30 = vadd.f32 %v597_v28, %v596_v51  ;;  %v583_v35 = vadd.f32 %v582_v29, %v581_v27 }
 0x175   : > { %v615_v39 = vadd.f32 %v614_v34, %v613_v22  ;;  %v599_v40 = vrot.slane %v598_v30, 2  ;;  %735 = vpush %v583_v35 }
 0x177   : > { %v600_v37 = vadd.f32 %v599_v40, %v598_v30  ;;  %v616_v41 = vrot.slane %v615_v39, 1 }
 0x179   : > { %v601_v43 = vrot.slane %v600_v37, 1  ;;  %v617_v53 = vadd.f32 %v616_v41, %v615_v39 }
 0x17b   : > { %v602_v44 = vadd.f32 %v601_v43, %v600_v37 }
 0x17d   : > { %737 = vpush %v602_v44 }
 0x17e   : > { %739 = vpush %v617_v53 }
 0x1a6   : > { %s736_s17 = spop %735 }
 0x1a7   : > { %s585_s18 = smul.f32 0.001, %s736_s17 }
 0x1a9   : > { %625 = sst [smem:[#allocation6 + $0x1]] %s585_s18 }
 0x1ae   : > { %s738_s19 = spop %737 }
 0x1af   : > { %s740_s22 = spop %739  ;;  %s604_s23 = smul.f32 0.001, %s738_s19 }
 0x1b0   : > { %s619_s0 = smul.f32 100.0, %s740_s22  ;;  %627 = sst [smem:[#allocation6 + $0x2]] %s740_s22 }
 0x1b2   : > { %s620_s24 = sadd.f32 %s619_s0, %s585_s18 }
 0x1b4   : > { %s621_s25 = sadd.f32 %s620_s24, %s604_s23 }
 0x1b6   : > { %623 = sst [smem:[#allocation6]] %s621_s25 }
 0x1b7 PF: > { %p745_p7 = scmp.eq.s32.totalorder %s846_s21, 3  ;;  %s634_s28 = sshll.u32 %s1044_s5, 4  ;;  %s635_s28 = int_to_ptr.hbm [resolvable:$true] %s634_s28 }
 0x1b8   : > { %s806_s29 = smov [#allocation6]  }
 0x1b9   : > { %742 = dma.smem_to_hbm (%p745_p7), %s806_s29, 16, %s635_s28, [#allocation7]  }
 0x1ba   : > { %797 = dma.done.wait (%p745_p7), [#allocation7], 16  }
 0x1bb   : > { %799 = vsyncadd (%p745_p7), [#allocation7], 4294967280 }
 0x1bc   : > { %643 = sfence }
 0x1bd PF: > { %s17_s20 = sadd.s32 1, %s802_s20  }
 0x1be   : > { %p14_p8 = scmp.ge.s32.totalorder %s17_s20, 6  }
 0x1c0   :  { %16 = sbr.rel (!%p14_p8) target bundleno = 3 (0x3), region = 84 }
 0x1c5   :  { %649 = vsyncpa [#allocation7], 1 }
 0x1c6   :  { %651 = vsyncpa [#allocation7 + $0x1], 1 }

</bundles_post_ra>
